<compile_context>
chip_gen: v7x
topology: tpu7x:2x2x1
jax: 0.10.0
libtpu: 0.0.40
codegen_flags: <defaults>
</compile_context>

<pallas_src>
import jax
import jax.numpy as jnp
from jax.experimental import pallas as pl
from jax.experimental.pallas import tpu as pltpu

_LANE = 128
_SUBLANE = 8


def _round_up(x, m):
    return (x + m - 1) // m * m


def _pad2(a, rows, cols, dtype):
    """Zero-pad a 2-D array to (rows, cols) and cast to dtype."""
    out = jnp.zeros((rows, cols), dtype)
    return out.at[: a.shape[0], : a.shape[1]].set(a.astype(dtype))


def discriminator_kernel(x_ref,
                         w1_ref, b1_ref,
                         w2_ref, b2_ref,
                         w3_ref, b3_ref,
                         w4_ref, b4_ref,
                         out_ref):
    """One batch tile of the fused forward pass.

    x_ref:   [TB, F]     f32 (cast to bf16 in-kernel)
    w1_ref:  [F,  H1p]   bf16   b1_ref: [1, H1p] f32
    w2_ref:  [H1p, H2p]  bf16   b2_ref: [1, H2p] f32
    w3_ref:  [H2p, H3p]  bf16   b3_ref: [1, H3p] f32
    w4_ref:  [8,  H3p]   bf16 (row 0 real)   b4_ref: [1, 1] f32 in SMEM
    out_ref: [1, TB]     f32 (lane-packed probabilities)
    """
    x = x_ref[...].astype(jnp.bfloat16)                                 # (TB, F)

    h = jnp.dot(x, w1_ref[...], preferred_element_type=jnp.float32) + b1_ref[...]
    h = jnp.maximum(h, 0.2 * h).astype(jnp.bfloat16)                    # LeakyReLU(0.2)

    h = jnp.dot(h, w2_ref[...], preferred_element_type=jnp.float32) + b2_ref[...]
    h = jnp.maximum(h, 0.2 * h).astype(jnp.bfloat16)

    h = jnp.dot(h, w3_ref[...], preferred_element_type=jnp.float32) + b3_ref[...]
    h = jnp.maximum(h, 0.2 * h).astype(jnp.bfloat16)                    # (TB, H3p)

    # Final Linear(h, 1): contract over H3p with the weight stored as a row
    # block (only row 0 real).  Result is already lane-packed along the batch,
    # avoiding a padded (TB, 128) output store.
    z = jax.lax.dot_general(
        w4_ref[...], h,
        dimension_numbers=(((1,), (1,)), ((), ())),
        preferred_element_type=jnp.float32)                              # (8, TB)
    z = z[0:1, :] + b4_ref[0, 0]                                         # (1, TB)

    # Exact sigmoid (exp on the EUP + exact divide): safe for downstream BCE/log.
    out_ref[...] = 1.0 / (1.0 + jnp.exp(-z))


def prepare_discriminator_params(params):
    """Pad/cast weights ONCE (bf16 for the MXU, lane-multiple output widths).

    Done outside the per-call forward so the pallas_call is the only consumer
    of weight HBM bandwidth at run time.
    """
    w1, b1 = params["w1"], params["b1"]
    w2, b2 = params["w2"], params["b2"]
    w3, b3 = params["w3"], params["b3"]
    w4, b4 = params["w4"], params["b4"]

    F = w1.shape[0]
    H1, H2, H3 = w1.shape[1], w2.shape[1], w3.shape[1]
    H1p, H2p, H3p = (_round_up(h, _LANE) for h in (H1, H2, H3))

    return {
        "F": F,
        "widest": max(H1p, H2p, H3p),
        # Layer-1 K dim stays at the true input_dim (full-dim block is legal and
        # avoids padding x's lanes); later K dims match the previous layer's
        # padded width (padded lanes carry zeros through LeakyReLU).
        "w1": _pad2(w1, F, H1p, jnp.bfloat16),
        "b1": _pad2(b1.reshape(1, -1), 1, H1p, jnp.float32),
        "w2": _pad2(w2, H1p, H2p, jnp.bfloat16),
        "b2": _pad2(b2.reshape(1, -1), 1, H2p, jnp.float32),
        "w3": _pad2(w3, H2p, H3p, jnp.bfloat16),
        "b3": _pad2(b3.reshape(1, -1), 1, H3p, jnp.float32),
        # Last layer stored as a row (1, H3) -> (8, H3p) so the kernel produces
        # the logit already lane-packed as (1, TB).
        "w4": _pad2(jnp.asarray(w4).T, _SUBLANE, H3p, jnp.bfloat16),
        "b4": jnp.asarray(b4, jnp.float32).reshape(1, 1),
    }


def _choose_batch_tile(B, block_b):
    """Batch tile: multiple of 8 sublanes; a multiple of 128 (or == padded B) so
    the lane-packed (1, TB) output block is legal; >= 2 tiles when the batch is
    large enough so the 'parallel' axis can shard across v7x's two cores."""
    if B < 2 * _LANE:
        tb = _round_up(B, _SUBLANE)
        return tb, tb
    tb = min(_round_up(block_b, _LANE), _round_up(pl.cdiv(B, 2), _LANE))
    return tb, _round_up(B, tb)


def _vmem_cap_bytes():
    """Generation-aware VMEM cap (v5e/v6e: 128 MiB, v7x: 64 MiB/TC) with headroom."""
    try:
        info = pltpu.get_tpu_info()
        cap = int(getattr(info, "vmem_capacity_bytes", 0))
        if cap > 0:
            return int(cap * 0.85)
    except Exception:
        pass
    return 48 << 20  # conservative fallback that fits every generation


def discriminator_forward(x, prep, *, block_b=512):
    """x: [B, input_dim] float32. prep: output of prepare_discriminator_params."""
    B, F = x.shape
    assert F == prep["F"], (F, prep["F"])

    TB, Bp = _choose_batch_tile(B, block_b)
    grid = (Bp // TB,)
    if Bp != B:
        # Row padding only (f32, no dtype round trip); usually a no-op for
        # batches that are multiples of the tile.
        x = jnp.pad(x, ((0, Bp - B), (0, 0)))

    w1, b1 = prep["w1"], prep["b1"]
    w2, b2 = prep["w2"], prep["b2"]
    w3, b3 = prep["w3"], prep["b3"]
    w4, b4 = prep["w4"], prep["b4"]

    def resident(arr):
        # Full-array block with a constant index_map -> stays in VMEM across
        # the grid (DMA'd once).
        # TODO(synk): use pipeline_mode=pl.Buffered(1) to single-buffer the
        # resident weights once verified on the target jax build (halves the
        # resident footprint, which matters on v7x at large hidden dims).
        return pl.BlockSpec(arr.shape, lambda i: (0, 0))

    x_spec = pl.BlockSpec((TB, F), lambda i: (i, 0))
    out_spec = pl.BlockSpec((1, TB), lambda i: (0, i))
    b4_spec = pl.BlockSpec(memory_space=pltpu.MemorySpace.SMEM)

    weight_bytes = sum(int(a.size) * a.dtype.itemsize
                       for a in (w1, b1, w2, b2, w3, b3, w4))
    needed = (2 * weight_bytes                       # residents (default double-buffer)
              + 2 * (TB * F * 4 + TB * 4)            # double-buffered x tile + out row
              + 6 * TB * prep["widest"] * 4          # f32/bf16 layer activations
              + (4 << 20))                           # slack for compiler scratch
    vmem_limit = int(min(max(needed, 32 << 20), _vmem_cap_bytes()))

    out_row = pl.pallas_call(
        discriminator_kernel,
        out_shape=jax.ShapeDtypeStruct((1, Bp), jnp.float32),
        grid=grid,
        in_specs=[x_spec,
                  resident(w1), resident(b1),
                  resident(w2), resident(b2),
                  resident(w3), resident(b3),
                  resident(w4), b4_spec],
        out_specs=out_spec,
        compiler_params=pltpu.CompilerParams(
            dimension_semantics=("parallel",),
            vmem_limit_bytes=vmem_limit),
    )(x, w1, b1, w2, b2, w3, b3, w4, b4)

    # Drop the batch padding; restore the torch-style (B, 1) output.
    return out_row[0, :B].reshape(B, 1)


def init_params(key, input_dim, hidden_dim):
    """Deterministic synthetic init matching the torch module's shapes."""
    dims = [(input_dim, hidden_dim * 4),
            (hidden_dim * 4, hidden_dim * 2),
            (hidden_dim * 2, hidden_dim),
            (hidden_dim, 1)]
    params = {}
    for i, (fan_in, fan_out) in enumerate(dims, start=1):
        key, kw, kb = jax.random.split(key, 3)
        bound = 1.0 / jnp.sqrt(fan_in)
        params[f"w{i}"] = jax.random.uniform(
            kw, (fan_in, fan_out), jnp.float32, -bound, bound)
        params[f"b{i}"] = jax.random.uniform(
            kb, (1, fan_out), jnp.float32, -bound, bound)
    return params


def reference_forward(x, params):
    """Pure-JAX f32 reference (mirrors the torch forward)."""
    h = x @ params["w1"] + params["b1"]
    h = jnp.where(h > 0, h, 0.2 * h)
    h = h @ params["w2"] + params["b2"]
    h = jnp.where(h > 0, h, 0.2 * h)
    h = h @ params["w3"] + params["b3"]
    h = jnp.where(h > 0, h, 0.2 * h)
    z = h @ params["w4"] + params["b4"]
    return jax.nn.sigmoid(z)


if __name__ == "__main__":
    input_dim = 16
    hidden_dim = 32
    batch = 2

    key = jax.random.PRNGKey(0)
    key, kx = jax.random.split(key)
    x = jax.random.normal(kx, (batch, input_dim), jnp.float32)

    params = init_params(key, input_dim, hidden_dim)
    prep = prepare_discriminator_params(params)   # pad/cast weights once

    out = discriminator_forward(x, prep)
    out = jax.block_until_ready(out)

    ref = reference_forward(x, params)
    assert out.shape == (batch, 1), out.shape
    # Kernel runs the matmuls in bf16 (f32 accumulation) -> loose tolerance vs f32 ref.
    assert jnp.allclose(out, ref, atol=2e-2, rtol=2e-2), (out, ref)

    print("KERNEL_OK")
</pallas_src>

<mosaic_0001>
module attributes {stable_mosaic.version = 11 : i64} {
  func.func @discriminator_kernel(%arg0: i32, %arg1: memref<8x16xf32, #tpu.memory_space<vmem>>, %arg2: memref<16x128xbf16, #tpu.memory_space<vmem>>, %arg3: memref<1x128xf32, #tpu.memory_space<vmem>>, %arg4: memref<128x128xbf16, #tpu.memory_space<vmem>>, %arg5: memref<1x128xf32, #tpu.memory_space<vmem>>, %arg6: memref<128x128xbf16, #tpu.memory_space<vmem>>, %arg7: memref<1x128xf32, #tpu.memory_space<vmem>>, %arg8: memref<8x128xbf16, #tpu.memory_space<vmem>>, %arg9: memref<1x1xf32, #tpu.memory_space<smem>>, %arg10: memref<1x8xf32, #tpu.memory_space<vmem>>) attributes {dimension_semantics = [#tpu.dimension_semantics<parallel>], iteration_bounds = array<i64: 1>, scalar_prefetch = 0 : i64, scratch_operands = 0 : i64, tpu.core_type = #tpu.core_type<tc>, window_params = [{transform_indices = @transform_0, window_bounds = array<i64: 8, 16>}, {pipeline_mode = #tpu.pipeline_mode<synchronous>, transform_indices = @transform_1, window_bounds = array<i64: 16, 128>}, {pipeline_mode = #tpu.pipeline_mode<synchronous>, transform_indices = @transform_2, window_bounds = array<i64: 1, 128>}, {pipeline_mode = #tpu.pipeline_mode<synchronous>, transform_indices = @transform_3, window_bounds = array<i64: 128, 128>}, {pipeline_mode = #tpu.pipeline_mode<synchronous>, transform_indices = @transform_4, window_bounds = array<i64: 1, 128>}, {pipeline_mode = #tpu.pipeline_mode<synchronous>, transform_indices = @transform_5, window_bounds = array<i64: 128, 128>}, {pipeline_mode = #tpu.pipeline_mode<synchronous>, transform_indices = @transform_6, window_bounds = array<i64: 1, 128>}, {pipeline_mode = #tpu.pipeline_mode<synchronous>, transform_indices = @transform_7, window_bounds = array<i64: 8, 128>}, {transform_indices = @transform_8, window_bounds = array<i64: 1, 1>}, {transform_indices = @transform_9, window_bounds = array<i64: 1, 8>}]} {
    %c0 = arith.constant 0 : index
    %c0_0 = arith.constant 0 : index
    %0 = vector.load %arg1[%c0, %c0_0] : memref<8x16xf32, #tpu.memory_space<vmem>>, vector<8x16xf32>
    %1 = arith.truncf %0 : vector<8x16xf32> to vector<8x16xbf16>
    %c0_1 = arith.constant 0 : index
    %c0_2 = arith.constant 0 : index
    %2 = vector.load %arg2[%c0_1, %c0_2] : memref<16x128xbf16, #tpu.memory_space<vmem>>, vector<16x128xbf16>
    %cst = arith.constant dense<0.000000e+00> : vector<8x128xf32>
    %3 = tpu.matmul %1, %2, %cst {dimension_numbers = #tpu.dot_dimension_numbers<[1], [0], [0], [1], [0, 0, 1, 1], [], []>} : vector<8x16xbf16>, vector<16x128xbf16>, vector<8x128xf32> -> vector<8x128xf32>
    %c0_3 = arith.constant 0 : index
    %c0_4 = arith.constant 0 : index
    %4 = vector.load %arg3[%c0_3, %c0_4] : memref<1x128xf32, #tpu.memory_space<vmem>>, vector<1x128xf32>
    %5 = vector.broadcast %4 : vector<1x128xf32> to vector<8x128xf32>
    %6 = arith.addf %3, %5 : vector<8x128xf32>
    %cst_5 = arith.constant 2.000000e-01 : f32
    %7 = vector.broadcast %cst_5 : f32 to vector<8x128xf32>
    %8 = arith.mulf %7, %6 : vector<8x128xf32>
    %9 = arith.maximumf %6, %8 : vector<8x128xf32>
    %10 = arith.truncf %9 : vector<8x128xf32> to vector<8x128xbf16>
    %c0_6 = arith.constant 0 : index
    %c0_7 = arith.constant 0 : index
    %11 = vector.load %arg4[%c0_6, %c0_7] : memref<128x128xbf16, #tpu.memory_space<vmem>>, vector<128x128xbf16>
    %cst_8 = arith.constant dense<0.000000e+00> : vector<8x128xf32>
    %12 = tpu.matmul %10, %11, %cst_8 {dimension_numbers = #tpu.dot_dimension_numbers<[1], [0], [0], [1], [0, 0, 1, 1], [], []>} : vector<8x128xbf16>, vector<128x128xbf16>, vector<8x128xf32> -> vector<8x128xf32>
    %c0_9 = arith.constant 0 : index
    %c0_10 = arith.constant 0 : index
    %13 = vector.load %arg5[%c0_9, %c0_10] : memref<1x128xf32, #tpu.memory_space<vmem>>, vector<1x128xf32>
    %14 = vector.broadcast %13 : vector<1x128xf32> to vector<8x128xf32>
    %15 = arith.addf %12, %14 : vector<8x128xf32>
    %cst_11 = arith.constant 2.000000e-01 : f32
    %16 = vector.broadcast %cst_11 : f32 to vector<8x128xf32>
    %17 = arith.mulf %16, %15 : vector<8x128xf32>
    %18 = arith.maximumf %15, %17 : vector<8x128xf32>
    %19 = arith.truncf %18 : vector<8x128xf32> to vector<8x128xbf16>
    %c0_12 = arith.constant 0 : index
    %c0_13 = arith.constant 0 : index
    %20 = vector.load %arg6[%c0_12, %c0_13] : memref<128x128xbf16, #tpu.memory_space<vmem>>, vector<128x128xbf16>
    %cst_14 = arith.constant dense<0.000000e+00> : vector<8x128xf32>
    %21 = tpu.matmul %19, %20, %cst_14 {dimension_numbers = #tpu.dot_dimension_numbers<[1], [0], [0], [1], [0, 0, 1, 1], [], []>} : vector<8x128xbf16>, vector<128x128xbf16>, vector<8x128xf32> -> vector<8x128xf32>
    %c0_15 = arith.constant 0 : index
    %c0_16 = arith.constant 0 : index
    %22 = vector.load %arg7[%c0_15, %c0_16] : memref<1x128xf32, #tpu.memory_space<vmem>>, vector<1x128xf32>
    %23 = vector.broadcast %22 : vector<1x128xf32> to vector<8x128xf32>
    %24 = arith.addf %21, %23 : vector<8x128xf32>
    %cst_17 = arith.constant 2.000000e-01 : f32
    %25 = vector.broadcast %cst_17 : f32 to vector<8x128xf32>
    %26 = arith.mulf %25, %24 : vector<8x128xf32>
    %27 = arith.maximumf %24, %26 : vector<8x128xf32>
    %28 = arith.truncf %27 : vector<8x128xf32> to vector<8x128xbf16>
    %c0_18 = arith.constant 0 : index
    %c0_19 = arith.constant 0 : index
    %29 = vector.load %arg8[%c0_18, %c0_19] : memref<8x128xbf16, #tpu.memory_space<vmem>>, vector<8x128xbf16>
    %cst_20 = arith.constant dense<0.000000e+00> : vector<8x8xf32>
    %30 = tpu.matmul %29, %28, %cst_20 {dimension_numbers = #tpu.dot_dimension_numbers<[1], [1], [0], [0], [0, 0, 1, 0], [], []>} : vector<8x128xbf16>, vector<8x128xbf16>, vector<8x8xf32> -> vector<8x8xf32>
    %31 = vector.extract_strided_slice %30 {offsets = [0, 0], sizes = [1, 8], strides = [1, 1]} : vector<8x8xf32> to vector<1x8xf32>
    %c0_21 = arith.constant 0 : index
    %c0_22 = arith.constant 0 : index
    %32 = memref.load %arg9[%c0_21, %c0_22] : memref<1x1xf32, #tpu.memory_space<smem>>
    %33 = vector.broadcast %32 : f32 to vector<1x8xf32>
    %34 = arith.addf %31, %33 : vector<1x8xf32>
    %cst_23 = arith.constant 0.000000e+00 : f32
    %35 = vector.broadcast %cst_23 : f32 to vector<1x8xf32>
    %36 = arith.subf %35, %34 : vector<1x8xf32>
    %37 = math.exp %36 : vector<1x8xf32>
    %cst_24 = arith.constant 1.000000e+00 : f32
    %38 = vector.broadcast %cst_24 : f32 to vector<1x8xf32>
    %39 = arith.addf %38, %37 : vector<1x8xf32>
    %cst_25 = arith.constant 1.000000e+00 : f32
    %40 = vector.broadcast %cst_25 : f32 to vector<1x8xf32>
    %41 = arith.divf %40, %39 : vector<1x8xf32>
    %c0_26 = arith.constant 0 : index
    %c0_27 = arith.constant 0 : index
    %42 = vector.load %arg10[%c0_26, %c0_27] : memref<1x8xf32, #tpu.memory_space<vmem>>, vector<1x8xf32>
    tpu.vector_store %arg10[%c0_26, %c0_27], %41 {strides = array<i32>} : memref<1x8xf32, #tpu.memory_space<vmem>>, vector<1x8xf32>,
    return
  }
  func.func @transform_0(%arg0: i32) -> (i32, i32) {
    %c0_i32 = arith.constant 0 : i32
    %c0_i32_0 = arith.constant 0 : i32
    return %arg0, %c0_i32 : i32, i32
  }
  func.func @transform_1(%arg0: i32) -> (i32, i32) {
    %c0_i32 = arith.constant 0 : i32
    %c0_i32_0 = arith.constant 0 : i32
    %c0_i32_1 = arith.constant 0 : i32
    return %c0_i32, %c0_i32_0 : i32, i32
  }
  func.func @transform_2(%arg0: i32) -> (i32, i32) {
    %c0_i32 = arith.constant 0 : i32
    %c0_i32_0 = arith.constant 0 : i32
    %c0_i32_1 = arith.constant 0 : i32
    return %c0_i32, %c0_i32_0 : i32, i32
  }
  func.func @transform_3(%arg0: i32) -> (i32, i32) {
    %c0_i32 = arith.constant 0 : i32
    %c0_i32_0 = arith.constant 0 : i32
    %c0_i32_1 = arith.constant 0 : i32
    return %c0_i32, %c0_i32_0 : i32, i32
  }
  func.func @transform_4(%arg0: i32) -> (i32, i32) {
    %c0_i32 = arith.constant 0 : i32
    %c0_i32_0 = arith.constant 0 : i32
    %c0_i32_1 = arith.constant 0 : i32
    return %c0_i32, %c0_i32_0 : i32, i32
  }
  func.func @transform_5(%arg0: i32) -> (i32, i32) {
    %c0_i32 = arith.constant 0 : i32
    %c0_i32_0 = arith.constant 0 : i32
    %c0_i32_1 = arith.constant 0 : i32
    return %c0_i32, %c0_i32_0 : i32, i32
  }
  func.func @transform_6(%arg0: i32) -> (i32, i32) {
    %c0_i32 = arith.constant 0 : i32
    %c0_i32_0 = arith.constant 0 : i32
    %c0_i32_1 = arith.constant 0 : i32
    return %c0_i32, %c0_i32_0 : i32, i32
  }
  func.func @transform_7(%arg0: i32) -> (i32, i32) {
    %c0_i32 = arith.constant 0 : i32
    %c0_i32_0 = arith.constant 0 : i32
    %c0_i32_1 = arith.constant 0 : i32
    return %c0_i32, %c0_i32_0 : i32, i32
  }
  func.func @transform_8(%arg0: i32) -> (i32, i32) {
    %c0_i32 = arith.constant 0 : i32
    %c0_i32_0 = arith.constant 0 : i32
    %c0_i32_1 = arith.constant 0 : i32
    return %c0_i32, %c0_i32_0 : i32, i32
  }
  func.func @transform_9(%arg0: i32) -> (i32, i32) {
    %c0_i32 = arith.constant 0 : i32
    %c0_i32_0 = arith.constant 0 : i32
    return %c0_i32, %arg0 : i32, i32
  }
}

</mosaic_0001>

<bundles_post_ra>
// kernel: tpu_custom_call.1
= control target key start
LH: loop header
LB: loop body
LE: loop exit
PB: predicated region body
PF: predicated region fallthrough
CT: control target
= control target key end

     0   :  { %15 = vsyncpa [#allocation4], 0  ;;  %s861_s0 = inlined_call_operand.hbm [shape: f32[8,16], index: 0, kind: input, shape index: {}]   ;;  %s862_s1 = inlined_call_operand.hbm [shape: bf16[16,128], index: 1, kind: input, shape index: {}]   ;;  %s863_s2 = inlined_call_operand.vmem [shape: f32[1,128], index: 2, kind: input, shape index: {}]   ;;  %s864_s3 = inlined_call_operand.hbm [shape: bf16[128,128], index: 3, kind: input, shape index: {}]   ;;  %s865_s4 = inlined_call_operand.vmem [shape: f32[1,128], index: 4, kind: input, shape index: {}]   ;;  %s866_s5 = inlined_call_operand.hbm [shape: bf16[128,128], index: 5, kind: input, shape index: {}]   ;;  %s867_s6 = inlined_call_operand.vmem [shape: f32[1,128], index: 6, kind: input, shape index: {}]   ;;  %s868_s7 = inlined_call_operand.vmem [shape: bf16[8,128], index: 7, kind: input, shape index: {}]   ;;  %s869_s8 = inlined_call_operand.<no memory space> [shape: f32[1,1], index: 8, kind: input, shape index: {}]   ;;  %s870_s9 = inlined_call_operand.hbm [shape: f32[1,8], index: 9, kind: output, shape index: {}]  }
   0x1   :  { %16 = vsyncpa [#allocation7], 0 }
   0x2   :  { %17 = vsyncpa [#allocation10], 0 }
   0x3   :  { %18 = vsyncpa [#allocation5], 0  ;;  %s692_s30 = smov [#allocation6]   ;;  %s574_s13 = scalar_lea.hbm %s862_s1, 128 }
   0x4   :  { %s34_s10 = sshll.u32 %s692_s30, 4  ;;  %p575_p0 = scmp.ne.s32.totalorder %s862_s1, %s574_s13  ;;  %s35_s10 = int_to_ptr.vmem [resolvable:$true] %s34_s10 }
   0x5   :  { %p578_p1 = scmp.lt.u32.totalorder %s574_s13, %s862_s1 }
   0x7   :  { %p580_p2 = pnand %p578_p1, %p575_p0 }
   0x9   :  { %583 = shalt.err (!%p580_p2)
}
   0xa   :  { %s584_s18 = scalar_lea.vmem %s35_s10, 128  ;;  %p589_p4 = scmp.lt.s32.totalorder %s35_s10, %s35_s10 }
   0xb   :  { %p585_p3 = scmp.ne.s32.totalorder %s35_s10, %s584_s18  ;;  %p590_p5 = scmp.lt.s32.totalorder %s584_s18, %s584_s18 }
   0xd   :  { %p591_p6 = por %p590_p5, %p589_p4 }
   0xf   :  { %p592_p7 = pnand %p591_p6, %p585_p3 }
  0x11   :  { %595 = shalt.err (!%p592_p7)
}
  0x12   :  { %s693_s19 = smov 64   ;;  %s694_s20 = smov 4  }
  0x13   :  { %40 = dma.hbm_to_vmem [thread:$0]  %s862_s1, 128, %s35_s10, [#allocation7], %s693_s19, %s693_s19, %s694_s20  }
  0x14   :  { %s695_s23 = smov [#allocation3]   ;;  %s696_s25 = smov [#allocation8]  }
  0x15   :  { %s25_s24 = sshll.u32 %s695_s23, 4  ;;  %s48_s26 = sshll.u32 %s696_s25, 4  ;;  %s26_s24 = int_to_ptr.vmem [resolvable:$true] %s25_s24  ;;  %s49_s26 = int_to_ptr.vmem [resolvable:$true] %s48_s26 }
  0x16   :  { %s596_s29 = scalar_lea.hbm %s861_s0, 128 }
  0x17   :  { %p597_p8 = scmp.ne.s32.totalorder %s861_s0, %s596_s29  ;;  %p600_p9 = scmp.lt.u32.totalorder %s596_s29, %s861_s0 }
  0x19   :  { %p602_p10 = pnand %p600_p9, %p597_p8 }
  0x1b   :  { %605 = shalt.err (!%p602_p10)
}
  0x1c   :  { %s606_s1 = scalar_lea.vmem %s26_s24, 128  ;;  %p611_p12 = scmp.lt.s32.totalorder %s26_s24, %s26_s24 }
  0x1d   :  { %p607_p11 = scmp.ne.s32.totalorder %s26_s24, %s606_s1  ;;  %p612_p13 = scmp.lt.s32.totalorder %s606_s1, %s606_s1 }
  0x1f   :  { %p613_p0 = por %p612_p13, %p611_p12 }
  0x21   :  { %p614_p1 = pnand %p613_p0, %p607_p11 }
  0x23   :  { %617 = shalt.err (!%p614_p1)
}
  0x24   :  { %28 = dma.hbm_to_vmem [thread:$0]  %s861_s0, 128, %s26_s24, [#allocation4]  }
  0x25   :  { %s618_s17 = scalar_lea.hbm %s864_s3, 1024 }
  0x26   :  { %p619_p2 = scmp.ne.s32.totalorder %s864_s3, %s618_s17  ;;  %p622_p3 = scmp.lt.u32.totalorder %s618_s17, %s864_s3 }
  0x28   :  { %p624_p4 = pnand %p622_p3, %p619_p2 }
  0x2a   :  { %627 = shalt.err (!%p624_p4)
}
  0x2b   :  { %s628_s25 = scalar_lea.vmem %s49_s26, 1024  ;;  %p633_p6 = scmp.lt.s32.totalorder %s49_s26, %s49_s26 }
  0x2c   :  { %p629_p5 = scmp.ne.s32.totalorder %s49_s26, %s628_s25  ;;  %p634_p7 = scmp.lt.s32.totalorder %s628_s25, %s628_s25 }
  0x2e   :  { %p635_p8 = por %p634_p7, %p633_p6 }
  0x30   :  { %p636_p9 = pnand %p635_p8, %p629_p5 }
  0x32   :  { %639 = shalt.err (!%p636_p9)
}
  0x33   :  { %54 = dma.hbm_to_vmem [thread:$0]  %s864_s3, 1024, %s49_s26, [#allocation7], %s693_s19, %s693_s19, %s694_s20  }
  0x34   :  { %s697_s27 = smov [#allocation9]   ;;  %s640_s11 = scalar_lea.hbm %s866_s5, 1024 }
  0x35   :  { %s62_s28 = sshll.u32 %s697_s27, 4  ;;  %p641_p10 = scmp.ne.s32.totalorder %s866_s5, %s640_s11  ;;  %s63_s28 = int_to_ptr.vmem [resolvable:$true] %s62_s28 }
  0x36   :  { %p644_p11 = scmp.lt.u32.totalorder %s640_s11, %s866_s5 }
  0x38   :  { %p646_p12 = pnand %p644_p11, %p641_p10 }
  0x3a   :  { %649 = shalt.err (!%p646_p12)
}
  0x3b   :  { %s650_s14 = scalar_lea.vmem %s63_s28, 1024  ;;  %p655_p0 = scmp.lt.s32.totalorder %s63_s28, %s63_s28 }
  0x3c   :  { %p651_p13 = scmp.ne.s32.totalorder %s63_s28, %s650_s14  ;;  %p656_p1 = scmp.lt.s32.totalorder %s650_s14, %s650_s14 }
  0x3e   :  { %p657_p2 = por %p656_p1, %p655_p0 }
  0x40   :  { %p658_p3 = pnand %p657_p2, %p651_p13 }
  0x42   :  { %661 = shalt.err (!%p658_p3)
}
  0x43   :  { %68 = dma.hbm_to_vmem [thread:$0]  %s866_s5, 1024, %s63_s28, [#allocation10], %s693_s19, %s693_s19, %s694_s20  }
  0x44   :  { %684 = dma.done.wait [#allocation4], 128  }
  0x45   :  { %685 = vsyncadd [#allocation4], 4294967168 }
  0x46   :  { %686 = dma.done.wait [#allocation7], 1152  }
  0x47   :  { %687 = vsyncadd [#allocation7], 4294966144 }
  0x48   :  { %688 = dma.done.wait [#allocation10], 1024  }
  0x49   :  { %689 = vsyncadd [#allocation10], 4294966272  ;;  %v698_v0 = vmov 0.0   ;;  %vm699_vm0 = vmmov 0   ;;  %v553_v1 = vld [vmem:[#allocation6] sm:$0xff]   ;;  %v88_v2 = vld [vmem:[#allocation3] sm:$0xff]  ;;  %v422_v48 = vstv %s869_s8 }
  0x4a   :  { %492 = vmatprep.subr.bf16.mxu0 %v698_v0  ;;  %494 = vmatprep.mubr.msk.bf16.mxu0 %vm699_vm0, %v698_v0  ;;  %v89_v3 = vpack.c.bf16 %v88_v2, %v88_v2  ;;  %vm105_vm1 = vcmask 130048   ;;  %v554_v4 = vld [vmem:[#allocation8] sm:$0xff]   ;;  %v555_v5 = vld [vmem:[#allocation8 + $0x8] sm:$0xff]   ;;  %v556_v6 = vld [vmem:[#allocation8 + $0x10] sm:$0xff]   ;;  %vm430_vm2 = vcmask 57344  }
  0x4b   :  { %498 = vmatprep.subr.bf16.mxu1 %v698_v0  ;;  %514 = vmatprep.mubr.msk.bf16.mxu1 %vm699_vm0, %v698_v0  ;;  %v557_v7 = vld [vmem:[#allocation8 + $0x18] sm:$0xff]   ;;  %v558_v8 = vld [vmem:[#allocation8 + $0x20] sm:$0xff]   ;;  %v559_v9 = vld [vmem:[#allocation8 + $0x28] sm:$0xff]  }
  0x4c   :  { %493 = vmatpush3.bf16.msra.mxu0 %v553_v1  ;;  %499 = vmatpush3.bf16.msra.mxu1 %v554_v4  ;;  %v560_v10 = vld [vmem:[#allocation8 + $0x30] sm:$0xff]   ;;  %v561_v11 = vld [vmem:[#allocation8 + $0x38] sm:$0xff]   ;;  %v562_v12 = vld [vmem:[#allocation9] sm:$0xff]  }
  0x4d   :  { %518 = vmatprep.subr.bf16.mxu0 %v698_v0  ;;  %500 = vmatprep.subr.bf16.mxu1 %v698_v0  ;;  %v563_v13 = vld [vmem:[#allocation9 + $0x8] sm:$0xff]   ;;  %v564_v14 = vld [vmem:[#allocation9 + $0x10] sm:$0xff]   ;;  %v565_v15 = vld [vmem:[#allocation9 + $0x18] sm:$0xff]  }
  0x4e   :  { %v566_v16 = vld [vmem:[#allocation9 + $0x20] sm:$0xff]   ;;  %v567_v17 = vld [vmem:[#allocation9 + $0x28] sm:$0xff]   ;;  %v449_v18 = vld [vmem:[%s863_s2] ss:$0 sm:$0xff] }
  0x4f   :  { %495 = vmatmul.mubr.msk.bf16.vlgmr.msra.gmra.mrb[0].mxu0 %vm105_vm1, %v89_v3  ;;  %v568_v27 = vld [vmem:[#allocation9 + $0x30] sm:$0xff]   ;;  %v569_v28 = vld [vmem:[#allocation9 + $0x38] sm:$0xff]  }
  0x50   :  { %534 = vmatprep.mubr.msk.bf16.mxu0 %vm699_vm0, %v698_v0  ;;  %501 = vmatpush3.bf16.msra.mxu1 %v555_v5  ;;  %v452_v29 = vld [vmem:[%s865_s4] ss:$0 sm:$0xff] }
  0x51   :  { %502 = vmatprep.subr.bf16.mxu1 %v698_v0  ;;  %519 = vmatpush3.bf16.msra.mxu0 %v562_v12  ;;  %v461_v38 = vld [vmem:[%s867_s6] ss:$0 sm:$0xff]  ;;  %s700_s6 = smov [#allocation11]  }
  0x52   :  { %520 = vmatprep.subr.bf16.mxu0 %v698_v0  ;;  %v380_v47 = vld [vmem:[%s868_s7] sm:$0xf]  ;;  %s438_s22 = sshll.u32 %s700_s6, 4  ;;  %s439_s22 = int_to_ptr.vmem [resolvable:$true] %s438_s22 }
  0x53   :  { %s662_s7 = scalar_lea.vmem %s439_s22, 16  ;;  %s666_s8 = scalar_lea.vmem %s439_s22, 32 }
  0x54   :  { %503 = vmatpush3.bf16.msra.mxu1 %v556_v6  ;;  %p663_p4 = scmp.ne.s32.totalorder %s439_s22, %s662_s7  ;;  %p667_p5 = scmp.lt.s32.totalorder %s439_s22, %s439_s22 }
  0x55   :  { %504 = vmatprep.subr.bf16.mxu1 %v698_v0  ;;  %521 = vmatpush3.bf16.msra.mxu0 %v563_v13  ;;  %p668_p6 = scmp.lt.s32.totalorder %s666_s8, %s662_s7 }
  0x56   :  { %522 = vmatprep.subr.bf16.mxu0 %v698_v0 }
  0x57   :  { %p669_p7 = por %p668_p6, %p667_p5 }
  0x58   :  { %505 = vmatpush3.bf16.msra.mxu1 %v557_v7 }
  0x59   :  { %506 = vmatprep.subr.bf16.mxu1 %v698_v0  ;;  %523 = vmatpush3.bf16.msra.mxu0 %v564_v14  ;;  %p670_p8 = pnand %p669_p7, %p663_p4 }
  0x5a   :  { %524 = vmatprep.subr.bf16.mxu0 %v698_v0 }
  0x5c   :  { %507 = vmatpush3.bf16.msra.mxu1 %v558_v8 }
  0x5d   :  { %508 = vmatprep.subr.bf16.mxu1 %v698_v0  ;;  %525 = vmatpush3.bf16.msra.mxu0 %v565_v15 }
  0x5e   :  { %526 = vmatprep.subr.bf16.mxu0 %v698_v0 }
  0x60   :  { %509 = vmatpush3.bf16.msra.mxu1 %v559_v9 }
  0x61   :  { %510 = vmatprep.subr.bf16.mxu1 %v698_v0  ;;  %527 = vmatpush3.bf16.msra.mxu0 %v566_v16 }
  0x62   :  { %528 = vmatprep.subr.bf16.mxu0 %v698_v0 }
  0x64   :  { %511 = vmatpush3.bf16.msra.mxu1 %v560_v10 }
  0x65   :  { %512 = vmatprep.subr.bf16.mxu1 %v698_v0  ;;  %529 = vmatpush3.bf16.msra.mxu0 %v567_v17 }
  0x66   :  { %530 = vmatprep.subr.bf16.mxu0 %v698_v0 }
  0x68   :  { %513 = vmatpush3.bf16.msra.mxu1 %v561_v11 }
  0x69   :  { %538 = vmatprep.subr.bf16.mxu1 %v698_v0  ;;  %531 = vmatpush3.bf16.msra.mxu0 %v568_v27 }
  0x6a   :  { %532 = vmatprep.subr.bf16.mxu0 %v698_v0 }
  0x6d   :  { %533 = vmatpush3.bf16.msra.mxu0 %v569_v28 }
 0x122   :  { %v143_v19 = vpop.f32.mrb[0].mxu0 }
 0x123   :  { %v144_v20 = vadd.f32 %v449_v18, %v143_v19  ;;  %v496_v21 = vpop.f32.mrb[1].mxu0 }
 0x124   :  { %v146_v22 = vpop.f32.mrb[2].mxu0 }
 0x125   :  { %v149_v23 = vmul.f32 0.2, %v144_v20  ;;  %v497_v24 = vpop.f32.mrb[3].mxu0 }
 0x127   :  { %v150_v25 = vmax.f32 %v144_v20, %v149_v23 }
 0x129   :  { %v151_v26 = vpack.c.bf16 %v150_v25, %v150_v25 }
 0x12b   :  { %515 = vmatmul.mubr.bf16.vlgmr.msra.gmra.mrb[0].mxu1 %v151_v26 }
 0x12c   :  { %540 = vmatprep.mubr.msk.bf16.mxu1 %vm699_vm0, %v698_v0 }
 0x1fe   :  { %v257_v30 = vpop.f32.mrb[0].mxu1 }
 0x1ff   :  { %v258_v31 = vadd.f32 %v452_v29, %v257_v30  ;;  %v516_v32 = vpop.f32.mrb[1].mxu1 }
 0x200   :  { %v260_v33 = vpop.f32.mrb[2].mxu1 }
 0x201   :  { %v263_v34 = vmul.f32 0.2, %v258_v31  ;;  %v517_v35 = vpop.f32.mrb[3].mxu1 }
 0x203   :  { %v264_v36 = vmax.f32 %v258_v31, %v263_v34 }
 0x205   :  { %v265_v37 = vpack.c.bf16 %v264_v36, %v264_v36 }
 0x207   :  { %535 = vmatmul.mubr.bf16.vlgmr.msra.gmra.mrb[4].mxu0 %v265_v37 }
 0x2da   :  { %v371_v39 = vpop.f32.mrb[4].mxu0 }
 0x2db   :  { %v372_v40 = vadd.f32 %v461_v38, %v371_v39  ;;  %v536_v41 = vpop.f32.mrb[5].mxu0 }
 0x2dc   :  { %v374_v42 = vpop.f32.mrb[6].mxu0 }
 0x2dd   :  { %v377_v43 = vmul.f32 0.2, %v372_v40  ;;  %v537_v44 = vpop.f32.mrb[7].mxu0 }
 0x2df   :  { %v378_v45 = vmax.f32 %v372_v40, %v377_v43 }
 0x2e1   :  { %v379_v46 = vpack.c.bf16 %v378_v45, %v378_v45 }
 0x2e3   :  { %539 = vmatpush3.bf16.xpose.msra.mxu1 %v379_v46 }
 0x2ea   :  { %541 = vmatmul.mubr.bf16.vlgmr.msra.gmra.mrb[4].mxu1 %v380_v47 }
 0x3bd   :  { %v415_v49 = vpop.f32.mrb[4].mxu1 }
 0x3be   :  { %v423_v50 = vadd.f32 %v422_v48, %v415_v49  ;;  %v542_v51 = vpop.f32.mrb[5].mxu1 }
 0x3bf   :  { %v418_v52 = vpop.f32.mrb[6].mxu1 }
 0x3c0   :  { %v424_v53 = vsub.f32 0.0, %v423_v50  ;;  %v543_v54 = vpop.f32.mrb[7].mxu1 }
 0x3c2   :  { %v425_v55 = vmul.f32 1.442695, %v424_v53 }
 0x3c4   :  { %570 = vpow2.f32 %v425_v55 }
 0x3ce   :  { %v571_v56 = vpop.eup %570 }
 0x3cf   :  { %v427_v57 = vadd.f32 1.0, %v571_v56 }
 0x3d1   :  { %572 = vrcp.f32 %v427_v57 }
 0x3db   :  { %v573_v58 = vpop.eup %572 }
 0x3dc   :  { %431 = vst.msk [vmem:[#allocation11] sm:$0x1] %vm430_vm2, %v573_v58 }
 0x3dd   :  { %673 = shalt.err (!%p670_p8)
}
 0x3de   :  { %s674_s0 = scalar_lea.hbm %s870_s9, 16 }
 0x3df   :  { %p675_p9 = scmp.ne.s32.totalorder %s870_s9, %s674_s0  ;;  %p678_p10 = scmp.lt.u32.totalorder %s674_s0, %s870_s9 }
 0x3e1   :  { %p680_p11 = pnand %p678_p10, %p675_p9 }
 0x3e3   :  { %683 = shalt.err (!%p680_p11)
}
 0x3e4   :  { %441 = dma.vmem_to_hbm [thread:$0]  %s439_s22, 16, %s870_s9, [#allocation5]  }
 0x3e5   :  { %690 = dma.done.wait [#allocation5], 16  }
 0x3e6   :  { %691 = vsyncadd [#allocation5], 4294967280 }
 0x3e7   :  { %445 = vsyncpa [#allocation4], 1 }
 0x3e8   :  { %446 = vsyncpa [#allocation7], 1 }
 0x3e9   :  { %447 = vsyncpa [#allocation10], 1 }
 0x3ea   :  { %448 = vsyncpa [#allocation5], 1 }

</bundles_post_ra>
